<compile_context>
chip_gen: v5e
topology: v5e:2x2
jax: 0.10.0
libtpu: 0.0.40
codegen_flags: <defaults>
</compile_context>

<pallas_src>
import functools

import jax
import jax.numpy as jnp
from jax import lax
from jax.experimental import pallas as pl
from jax.experimental.pallas import tpu as pltpu

EPS = 1e-16
_LANES = 128
_MAX_BLOCK_BYTES = 4 * 1024 * 1024   # per-input VMEM block (x2 inputs x2 buffers = 16 MiB)
_MAX_TILE = 32768                    # lane cap per block


def _round_up(x, m):
    return (x + m - 1) // m * m


def _choose_fold(rows, hw):
    # Fold part of the spatial axis into the row axis so rows fill the
    # 8-sublane vregs (important for small N*C, e.g. N*C == 4).
    for k in (1, 2, 4, 8):
        if (rows * k) % 8 == 0 and hw % k == 0:
            return k
    return 1


def _pick_row_tile(r2):
    if r2 % 8 != 0:
        return r2  # "block == full array dim" exception: single row block, no padding
    for c in (64, 32, 16, 8):
        if r2 % c == 0:
            return c
    return 8


def _iou_partial_kernel(pred_ref, target_ref, inter_ref, sums_ref,
                        *, tile, hw_valid, ragged, unroll):
    """One (row_tile, tile) block -> (row_tile, 128) lane-wide partials of p*t and p+t."""
    row_tile = pred_ref.shape[0]
    n_slabs = tile // _LANES
    base = pl.program_id(1) * tile          # global lane offset of this block
    zeros = jnp.zeros((row_tile, _LANES), jnp.float32)

    def slab(s, carry):
        inter_acc, sums_acc = carry
        lo = pl.multiple_of(s * _LANES, _LANES)
        p = pred_ref[:, pl.ds(lo, _LANES)].astype(jnp.float32)
        t = target_ref[:, pl.ds(lo, _LANES)].astype(jnp.float32)
        if ragged:  # static: only emitted when HW2 % tile != 0
            lane = lax.broadcasted_iota(jnp.int32, (row_tile, _LANES), 1)
            valid = (base + lo + lane) < hw_valid
            p = jnp.where(valid, p, 0.0)
            t = jnp.where(valid, t, 0.0)
        return inter_acc + p * t, sums_acc + (p + t)

    # Register (vreg) accumulation: one VMEM store per output per grid step.
    inter_acc, sums_acc = lax.fori_loop(0, n_slabs, slab, (zeros, zeros),
                                        unroll=unroll)
    inter_ref[...] = inter_acc
    sums_ref[...] = sums_acc


def yolop_iou_loss_v2(pred, target, n_classes=2):
    """pred, target: (N, n_classes, H, W), non-negative -> scalar mean soft-IoU."""
    N, C, H, W = pred.shape
    assert C == n_classes
    R, HW = N * C, H * W

    fold = _choose_fold(R, HW)
    R2, HW2 = R * fold, HW // fold

    # Pure views: no HBM copy, no padding.
    pred2d = pred.reshape(R2, HW2)
    target2d = target.reshape(R2, HW2)

    itemsize = jnp.dtype(pred.dtype).itemsize
    row_tile = _pick_row_tile(R2)

    # Lane tile: multiple of 128, capped so one input block stays <= ~4 MiB.
    tile_cap = (_MAX_BLOCK_BYTES // (row_tile * itemsize)) // _LANES * _LANES
    tile_cap = max(_LANES, min(_MAX_TILE, tile_cap))
    tile = min(tile_cap, _round_up(HW2, _LANES))

    n_i = R2 // row_tile                 # exact: row_tile divides R2 (or equals it)
    n_j = pl.cdiv(HW2, tile)
    ragged = (HW2 % tile) != 0
    n_slabs = tile // _LANES
    unroll = min(8, n_slabs)

    kernel = functools.partial(_iou_partial_kernel, tile=tile, hw_valid=HW2,
                               ragged=ragged, unroll=unroll)

    cost = pl.CostEstimate(
        flops=4 * R * HW,                # mul, acc, add, acc per element
        transcendentals=0,
        bytes_accessed=2 * R2 * HW2 * itemsize + 2 * n_j * R2 * _LANES * 4,
    )

    inter_out, sums_out = pl.pallas_call(
        kernel,
        out_shape=(
            jax.ShapeDtypeStruct((n_j, R2, _LANES), jnp.float32),
            jax.ShapeDtypeStruct((n_j, R2, _LANES), jnp.float32),
        ),
        grid_spec=pltpu.PrefetchScalarGridSpec(
            num_scalar_prefetch=0,
            grid=(n_i, n_j),
            in_specs=[
                pl.BlockSpec((row_tile, tile), lambda i, j: (i, j)),
                pl.BlockSpec((row_tile, tile), lambda i, j: (i, j)),
            ],
            out_specs=[
                pl.BlockSpec((None, row_tile, _LANES), lambda i, j: (j, i, 0)),
                pl.BlockSpec((None, row_tile, _LANES), lambda i, j: (j, i, 0)),
            ],
        ),
        compiler_params=pltpu.CompilerParams(
            dimension_semantics=("parallel", "parallel"),
            vmem_limit_bytes=32 * 1024 * 1024,
        ),
        cost_estimate=cost,
    )(pred2d, target2d)

    # Finalize on tiny (n_j, R2, 128) partials: reduce over spatial blocks and
    # lanes, un-fold, union algebra, ratio and mean.
    inter = inter_out.sum(axis=(0, 2))
    sums = sums_out.sum(axis=(0, 2))
    if fold > 1:
        inter = inter.reshape(R, fold).sum(axis=1)
        sums = sums.reshape(R, fold).sum(axis=1)
    union = sums - inter
    return jnp.mean(inter / (union + EPS))


def _reference(pred, target, n_classes=2):
    N = pred.shape[0]
    pt = pred * target
    inter = pt.reshape(N, n_classes, -1).sum(axis=2)
    union = (pred + target - pt).reshape(N, n_classes, -1).sum(axis=2)
    return jnp.mean(inter / (union + EPS))


if __name__ == "__main__":
    key = jax.random.PRNGKey(0)
    k1, k2 = jax.random.split(key)
    N, C, H, W = 2, 2, 16, 16
    # Soft predictions in [0,1] and binary-ish targets, as YOLOP uses.
    pred = jax.nn.sigmoid(jax.random.normal(k1, (N, C, H, W), jnp.float32))
    target = (jax.random.uniform(k2, (N, C, H, W)) > 0.5).astype(jnp.float32)

    loss = jax.jit(yolop_iou_loss_v2)(pred, target)
    jax.block_until_ready(loss)

    ref = _reference(pred, target)
    assert jnp.allclose(loss, ref, rtol=1e-5, atol=1e-6), (loss, ref)
    print("KERNEL_OK")
</pallas_src>

<mosaic_0001>
module attributes {stable_mosaic.version = 11 : i64} {
  func.func @_iou_partial_kernel(%arg0: i32, %arg1: i32, %arg2: memref<8x128xf32, #tpu.memory_space<vmem>>, %arg3: memref<8x128xf32, #tpu.memory_space<vmem>>, %arg4: memref<1x8x128xf32, #tpu.memory_space<vmem>>, %arg5: memref<1x8x128xf32, #tpu.memory_space<vmem>>) attributes {dimension_semantics = [#tpu.dimension_semantics<parallel>, #tpu.dimension_semantics<parallel>], iteration_bounds = array<i64: 1, 1>, scalar_prefetch = 0 : i64, scratch_operands = 0 : i64, tpu.core_type = #tpu.core_type<tc>, window_params = [{transform_indices = @transform_0, window_bounds = array<i64: 8, 128>}, {transform_indices = @transform_1, window_bounds = array<i64: 8, 128>}, {transform_indices = @transform_2, window_bounds = array<i64: 1, 8, 128>}, {transform_indices = @transform_3, window_bounds = array<i64: 1, 8, 128>}]} {
    %cst = arith.constant 0.000000e+00 : f32
    %0 = vector.broadcast %cst : f32 to vector<8x128xf32>
    %c0_i32 = arith.constant 0 : i32
    %c128_i32 = arith.constant 128 : i32
    %1 = arith.muli %c0_i32, %c128_i32 : i32
    %2 = tpu.assume_multiple %1, 128 : i32
    %c0 = arith.constant 0 : index
    %3 = arith.index_cast %2 : i32 to index
    %4 = vector.load %arg2[%c0, %3] : memref<8x128xf32, #tpu.memory_space<vmem>>, vector<8x128xf32>
    %c0_0 = arith.constant 0 : index
    %5 = arith.index_cast %2 : i32 to index
    %6 = vector.load %arg3[%c0_0, %5] : memref<8x128xf32, #tpu.memory_space<vmem>>, vector<8x128xf32>
    %7 = arith.mulf %4, %6 : vector<8x128xf32>
    %8 = arith.addf %0, %7 : vector<8x128xf32>
    %9 = arith.addf %4, %6 : vector<8x128xf32>
    %10 = arith.addf %0, %9 : vector<8x128xf32>
    %c1_i32 = arith.constant 1 : i32
    %c0_1 = arith.constant 0 : index
    %c0_2 = arith.constant 0 : index
    %c0_3 = arith.constant 0 : index
    %11 = vector.load %arg4[%c0_1, %c0_2, %c0_3] : memref<1x8x128xf32, #tpu.memory_space<vmem>>, vector<1x8x128xf32>
    %12 = vector.shape_cast %11 : vector<1x8x128xf32> to vector<8x128xf32>
    %13 = vector.shape_cast %8 : vector<8x128xf32> to vector<1x8x128xf32>
    tpu.vector_store %arg4[%c0_1, %c0_2, %c0_3], %13 {strides = array<i32>} : memref<1x8x128xf32, #tpu.memory_space<vmem>>, vector<1x8x128xf32>,
    %c0_4 = arith.constant 0 : index
    %c0_5 = arith.constant 0 : index
    %c0_6 = arith.constant 0 : index
    %14 = vector.load %arg5[%c0_4, %c0_5, %c0_6] : memref<1x8x128xf32, #tpu.memory_space<vmem>>, vector<1x8x128xf32>
    %15 = vector.shape_cast %14 : vector<1x8x128xf32> to vector<8x128xf32>
    %16 = vector.shape_cast %10 : vector<8x128xf32> to vector<1x8x128xf32>
    tpu.vector_store %arg5[%c0_4, %c0_5, %c0_6], %16 {strides = array<i32>} : memref<1x8x128xf32, #tpu.memory_space<vmem>>, vector<1x8x128xf32>,
    return
  }
  func.func @transform_0(%arg0: i32, %arg1: i32) -> (i32, i32) {
    %c0_i32 = arith.constant 0 : i32
    return %arg0, %arg1 : i32, i32
  }
  func.func @transform_1(%arg0: i32, %arg1: i32) -> (i32, i32) {
    %c0_i32 = arith.constant 0 : i32
    return %arg0, %arg1 : i32, i32
  }
  func.func @transform_2(%arg0: i32, %arg1: i32) -> (i32, i32, i32) {
    %c0_i32 = arith.constant 0 : i32
    %c0_i32_0 = arith.constant 0 : i32
    return %arg1, %arg0, %c0_i32 : i32, i32, i32
  }
  func.func @transform_3(%arg0: i32, %arg1: i32) -> (i32, i32, i32) {
    %c0_i32 = arith.constant 0 : i32
    %c0_i32_0 = arith.constant 0 : i32
    return %arg1, %arg0, %c0_i32 : i32, i32, i32
  }
}

</mosaic_0001>

<bundles_post_ra>
// kernel: yolop_iou_loss_v2.1
= control target key start
LH: loop header
LB: loop body
LE: loop exit
PB: predicated region body
PF: predicated region fallthrough
CT: control target
= control target key end

     0   :  { %s61_s0 = inlined_call_operand.vmem [shape: f32[8,128], index: 0, kind: input, shape index: {}]   ;;  %s62_s1 = inlined_call_operand.vmem [shape: f32[8,128], index: 1, kind: input, shape index: {}]   ;;  %s63_s2 = inlined_call_operand.vmem [shape: f32[1,8,128], index: 2, kind: output, shape index: {0}]   ;;  %s64_s3 = inlined_call_operand.vmem [shape: f32[1,8,128], index: 3, kind: output, shape index: {1}]  }
   0x1   :  { %v13_v0 = vld [vmem:[%s61_s0] sm:$0xff] }
   0x2   :  { %v14_v1 = vld [vmem:[%s62_s1] sm:$0xff] }
   0x3   :  { %v15_v2 = vmul.f32 %v14_v1, %v13_v0  ;;  %v17_v3 = vadd.f32 %v14_v1, %v13_v0 }
   0x5   :  { %19 = vst [vmem:[%s63_s2] sm:$0xff] %v15_v2 }
   0x6   :  { %20 = vst [vmem:[%s64_s3] sm:$0xff] %v17_v3 }

</bundles_post_ra>
